<compile_context>
chip_gen: v5e
topology: v5e:2x2
jax: 0.10.0
libtpu: 0.0.40
codegen_flags: <defaults>
</compile_context>

<pallas_src>
import jax
import jax.numpy as jnp
from jax.experimental import pallas as pl
from jax.experimental.pallas import tpu as pltpu


def _quick_gelu(x):
    # CLIP's "quick_gelu": x * sigmoid(1.702 * x)
    return x * jax.nn.sigmoid(1.702 * x)


def _round_up(x, m):
    return (x + m - 1) // m * m


def _device_kind():
    try:
        return jax.devices()[0].device_kind.lower()
    except Exception:
        return ""


def _vmem_capacity_bytes():
    try:
        return int(pltpu.get_tpu_info().vmem_capacity_bytes)
    except Exception:
        pass
    kind = _device_kind()
    return (64 if "v7" in kind else 128) * 1024 * 1024


def _default_tiles():
    """(tm, ti) defaults per TPU generation (see perf review)."""
    kind = _device_kind()
    if "v7" in kind:          # 64 MiB VMEM/TC, ~310 FLOP/B roofline, 2 TCs
        return 512, 1024
    if "v6" in kind:          # 128 MiB VMEM, ~650 FLOP/B roofline
        return 1024, 1024
    if "v5" in kind:          # v5e: bf16 roofline ~240 FLOP/B, 1 vst slot
        return 256, 1024
    return 512, 1024          # unknown chip: moderate defaults


def _maybe_buffered_spec(shape, index_map, buffer_count):
    """BlockSpec with pipeline_mode=pl.Buffered(n) when available/requested."""
    if buffer_count is not None and hasattr(pl, "Buffered"):
        try:
            return pl.BlockSpec(shape, index_map,
                                pipeline_mode=pl.Buffered(buffer_count))
        except Exception:
            pass
    return pl.BlockSpec(shape, index_map)


def _make_kernel(ti_eff, nj, resident, acc_in_out):
    """Build the kernel body.

    ti_eff:     I-chunk width (multiple of 128).
    nj:         number of I chunks (static).
    resident:   weights are full-array VMEM blocks -> slice the chunk in-kernel.
    acc_in_out: output dtype is f32 -> accumulate directly into o_ref.
    """

    def kernel(x_ref, w1_ref, b1_ref, w2_ref, b2_ref, o_ref, acc_ref=None):
        j = pl.program_id(1)

        if resident and nj > 1:
            start = pl.multiple_of(j * ti_eff, ti_eff)   # 128-aligned
            w1c = w1_ref[:, pl.ds(start, ti_eff)]        # (Hp, ti)
            w2c = w2_ref[pl.ds(start, ti_eff), :]        # (ti, Hp)
        else:
            w1c = w1_ref[...]
            w2c = w2_ref[...]

        # fc1 chunk: (tm, Hp) @ (Hp, ti) + (1, ti); f32 MXU accumulation.
        h = jnp.dot(x_ref[...], w1c,
                    preferred_element_type=jnp.float32) + b1_ref[...]
        h = _quick_gelu(h)
        # fc2 partial product: (tm, ti) @ (ti, Hp), f32.
        p = jnp.dot(h.astype(w2c.dtype), w2c,
                    preferred_element_type=jnp.float32)

        if nj == 1:
            # Single I chunk: no accumulator at all.
            o_ref[...] = (p + b2_ref[...]).astype(o_ref.dtype)
            return

        acc = o_ref if acc_in_out else acc_ref

        @pl.when(j == 0)
        def _():
            acc[...] = p                       # init with first partial

        @pl.when(jnp.logical_and(j > 0, j < nj - 1))
        def _():
            acc[...] += p                      # middle partials

        @pl.when(j == nj - 1)
        def _():
            # Fuse the last partial + bias into the final write (no extra RMW).
            o_ref[...] = (acc[...] + p + b2_ref[...]).astype(o_ref.dtype)

    return kernel


def clip_mlp(hidden_states, w1, b1, w2, b2, *, tm=None, ti=None,
             compute_dtype=jnp.bfloat16, force_streaming=False):
    """CLIPMLP forward: quick_gelu(x @ w1 + b1) @ w2 + b2.

    hidden_states: [B, S, H]; w1: [H, I]; b1: [I]; w2: [I, H]; b2: [H]
    (weights stored as [in_features, out_features], i.e. torch `weight.T`).

    compute_dtype: matmul-operand dtype (bf16 default; accumulation is always
    f32 and biases stay f32).  Store/pass weights already in this dtype to
    avoid a per-call cast.  compute_dtype=None keeps the input dtypes.
    """
    B, S, H = hidden_states.shape
    I = w1.shape[1]
    M = B * S
    out_dtype = hidden_states.dtype

    kind = _device_kind()
    def_tm, def_ti = _default_tiles()
    tm = def_tm if tm is None else tm
    ti = def_ti if ti is None else ti

    # ---- padded, lane-dense geometry (everything a multiple of (8, 128)) ---
    Hp = _round_up(H, 128)
    Ip0 = _round_up(I, 128)
    ti_eff = min(_round_up(ti, 128), Ip0)
    Ip = _round_up(Ip0, ti_eff)
    nj = Ip // ti_eff

    tm_eff = min(_round_up(tm, 8), _round_up(M, 8))
    # v7x: two TensorCores share the "parallel" row axis -> make sure there are
    # at least two row tiles when M is big enough to split.
    if "v7" in kind and M >= 256 and pl.cdiv(M, tm_eff) < 2:
        tm_eff = min(tm_eff, _round_up(pl.cdiv(M, 2), 128))
    Mp = _round_up(M, tm_eff)
    n_row_tiles = Mp // tm_eff

    # ---- operands (cast once, then zero-pad; padding is exact: gelu(0)=0 and
    #      padded w2 rows are zero, so padded I columns contribute nothing) ----
    x2 = hidden_states.reshape(M, H)
    if compute_dtype is not None:
        x2 = x2.astype(compute_dtype)
        w1 = w1.astype(compute_dtype)   # no-op if weights already stored bf16
        w2 = w2.astype(compute_dtype)
    x2 = jnp.pad(x2, ((0, Mp - M), (0, Hp - H)))
    w1p = jnp.pad(w1, ((0, Hp - H), (0, Ip - I)))
    w2p = jnp.pad(w2, ((0, Ip - I), (0, Hp - H)))
    b1p = jnp.pad(b1.astype(jnp.float32), (0, Ip - I)).reshape(1, Ip)
    b2p = jnp.pad(b2.astype(jnp.float32), (0, Hp - H)).reshape(1, Hp)

    w_itemsize = jnp.dtype(w1p.dtype).itemsize
    x_itemsize = jnp.dtype(x2.dtype).itemsize
    out_itemsize = jnp.dtype(out_dtype).itemsize

    # ---- per-generation VMEM budget (leave compiler headroom) --------------
    vmem_cap = _vmem_capacity_bytes()
    vmem_limit = int(min(vmem_cap - 12 * 1024 * 1024, vmem_cap * 7 // 8))
    vmem_limit = max(vmem_limit, 32 * 1024 * 1024)

    acc_in_out = (out_dtype == jnp.float32)          # accumulate into o_ref
    needs_scratch = (nj > 1) and (not acc_in_out)    # f32 scratch otherwise

    weight_buf = 1 if hasattr(pl, "Buffered") else 2
    resident_bytes = weight_buf * (Hp * Ip + Ip * Hp) * w_itemsize
    per_step_bytes = (2 * tm_eff * Hp * x_itemsize        # x tile (dbl-buffered)
                      + 2 * tm_eff * Hp * out_itemsize    # output tile
                      + (tm_eff * Hp * 4 if needs_scratch else 0)
                      + 2 * tm_eff * ti_eff * 4           # fc1/gelu temporaries
                      + 4 * (Ip + Hp) * 4)                # biases (tiny)
    resident = (not force_streaming) and (
        resident_bytes + per_step_bytes <= int(0.7 * vmem_limit))

    # streaming path: 3-deep buffering on 128-MiB-VMEM chips to hide DMA
    stream_buffers = 3 if vmem_cap >= 100 * 1024 * 1024 else None

    scratch_shapes = ([pltpu.VMEM((tm_eff, Hp), jnp.float32)]
                      if needs_scratch else [])

    w_passes = 1 if resident else n_row_tiles
    cost = pl.CostEstimate(
        flops=int(4 * M * H * I),                  # fc1 + fc2 matmuls
        transcendentals=int(M * I),                # sigmoid in quick_gelu
        bytes_accessed=int(
            x_itemsize * Mp * Hp
            + w_itemsize * w_passes * (Hp * Ip + Ip * Hp)
            + 4 * (Ip + Hp)
            + out_itemsize * Mp * Hp),
    )

    def _build_and_call(use_pipeline_mode):
        if resident:
            wbuf = 1 if use_pipeline_mode else None
            w1_spec = _maybe_buffered_spec((Hp, Ip), lambda i, j: (0, 0), wbuf)
            w2_spec = _maybe_buffered_spec((Ip, Hp), lambda i, j: (0, 0), wbuf)
        else:
            wbuf = stream_buffers if use_pipeline_mode else None
            w1_spec = _maybe_buffered_spec((Hp, ti_eff), lambda i, j: (0, j), wbuf)
            w2_spec = _maybe_buffered_spec((ti_eff, Hp), lambda i, j: (j, 0), wbuf)

        in_specs = [
            pl.BlockSpec((tm_eff, Hp), lambda i, j: (i, 0)),   # x row tile
            w1_spec,                                           # fc1 weights
            pl.BlockSpec((1, ti_eff), lambda i, j: (0, j)),    # fc1 bias chunk
            w2_spec,                                           # fc2 weights
            pl.BlockSpec((1, Hp), lambda i, j: (0, 0)),        # fc2 bias
        ]

        return pl.pallas_call(
            _make_kernel(ti_eff, nj, resident, acc_in_out),
            out_shape=jax.ShapeDtypeStruct((Mp, Hp), out_dtype),
            grid_spec=pltpu.PrefetchScalarGridSpec(
                num_scalar_prefetch=0,
                grid=(n_row_tiles, nj),
                in_specs=in_specs,
                out_specs=pl.BlockSpec((tm_eff, Hp), lambda i, j: (i, 0)),
                scratch_shapes=scratch_shapes,
            ),
            compiler_params=pltpu.CompilerParams(
                dimension_semantics=("parallel", "arbitrary"),
                vmem_limit_bytes=vmem_limit,
            ),
            cost_estimate=cost,
        )(x2, w1p, b1p, w2p, b2p)

    try:
        out2 = _build_and_call(True)
    except Exception:
        # Fallback if pipeline_mode=pl.Buffered(...) is unsupported by this
        # JAX/Mosaic version: identical kernel with default double buffering.
        out2 = _build_and_call(False)

    return out2[:M, :H].reshape(B, S, H)


def clip_mlp_ref(x, w1, b1, w2, b2):
    h = x @ w1 + b1
    h = _quick_gelu(h)
    return h @ w2 + b2


if __name__ == "__main__":
    # Config: hidden_size=32, intermediate_size=128, hidden_act="quick_gelu"
    B, S, H, I = 2, 8, 32, 128

    key = jax.random.PRNGKey(0)
    kx, kw1, kb1, kw2, kb2 = jax.random.split(key, 5)

    x = jax.random.normal(kx, (B, S, H), dtype=jnp.float32)
    # Deterministic parameter init (fc1: H->I, fc2: I->H), stored as [in, out].
    w1 = jax.random.normal(kw1, (H, I), dtype=jnp.float32) * 0.02
    b1 = jax.random.normal(kb1, (I,), dtype=jnp.float32) * 0.02
    w2 = jax.random.normal(kw2, (I, H), dtype=jnp.float32) * 0.02
    b2 = jax.random.normal(kb2, (H,), dtype=jnp.float32) * 0.02

    ref = clip_mlp_ref(x, w1, b1, w2, b2)

    # 1) f32 operands, resident weights, single I chunk (tight tolerance).
    out_f32 = jax.block_until_ready(
        clip_mlp(x, w1, b1, w2, b2, compute_dtype=jnp.float32))
    assert out_f32.shape == (B, S, H)
    assert jnp.allclose(out_f32, ref, atol=1e-5, rtol=1e-5)

    # 2) Larger intermediate (I=256) to exercise multi-chunk accumulation,
    #    in-kernel resident-weight slicing, and the streaming path.
    I2 = 256
    w1b = jax.random.normal(kw1, (H, I2), dtype=jnp.float32) * 0.02
    b1b = jax.random.normal(kb1, (I2,), dtype=jnp.float32) * 0.02
    w2b = jax.random.normal(kw2, (I2, H), dtype=jnp.float32) * 0.02
    b2b = jax.random.normal(kb2, (H,), dtype=jnp.float32) * 0.02
    ref_b = clip_mlp_ref(x, w1b, b1b, w2b, b2b)

    out_res_multi = jax.block_until_ready(
        clip_mlp(x, w1b, b1b, w2b, b2b, compute_dtype=jnp.float32, ti=128))
    assert jnp.allclose(out_res_multi, ref_b, atol=1e-5, rtol=1e-5)

    out_stream = jax.block_until_ready(
        clip_mlp(x, w1b, b1b, w2b, b2b, compute_dtype=jnp.float32, ti=128,
                 force_streaming=True))
    assert jnp.allclose(out_stream, ref_b, atol=1e-5, rtol=1e-5)

    # 3) bf16 input + bf16 operands, multi-chunk (exercises the f32 VMEM
    #    accumulator scratch path) -- loose tolerance.
    x_bf16 = x.astype(jnp.bfloat16)
    out_bf16_in = jax.block_until_ready(
        clip_mlp(x_bf16, w1b, b1b, w2b, b2b, ti=128))
    assert jnp.allclose(out_bf16_in.astype(jnp.float32), ref_b,
                        atol=3e-2, rtol=3e-2)

    # 4) Default path (bf16 operands, f32 accumulation, f32 output).
    out_default = jax.block_until_ready(clip_mlp(x, w1, b1, w2, b2))
    assert jnp.allclose(out_default, ref, atol=3e-2, rtol=3e-2)

    print("KERNEL_OK")
</pallas_src>

<mosaic_0001>
module attributes {stable_mosaic.version = 11 : i64} {
  func.func @kernel(%arg0: i32, %arg1: i32, %arg2: memref<16x128xf32, #tpu.memory_space<vmem>>, %arg3: memref<128x128xf32, #tpu.memory_space<vmem>>, %arg4: memref<1x128xf32, #tpu.memory_space<vmem>>, %arg5: memref<128x128xf32, #tpu.memory_space<vmem>>, %arg6: memref<1x128xf32, #tpu.memory_space<vmem>>, %arg7: memref<16x128xf32, #tpu.memory_space<vmem>>) attributes {dimension_semantics = [#tpu.dimension_semantics<parallel>, #tpu.dimension_semantics<arbitrary>], iteration_bounds = array<i64: 1, 1>, scalar_prefetch = 0 : i64, scratch_operands = 0 : i64, tpu.core_type = #tpu.core_type<tc>, window_params = [{transform_indices = @transform_0, window_bounds = array<i64: 16, 128>}, {pipeline_mode = #tpu.pipeline_mode<synchronous>, transform_indices = @transform_1, window_bounds = array<i64: 128, 128>}, {transform_indices = @transform_2, window_bounds = array<i64: 1, 128>}, {pipeline_mode = #tpu.pipeline_mode<synchronous>, transform_indices = @transform_3, window_bounds = array<i64: 128, 128>}, {pipeline_mode = #tpu.pipeline_mode<synchronous>, transform_indices = @transform_4, window_bounds = array<i64: 1, 128>}, {transform_indices = @transform_5, window_bounds = array<i64: 16, 128>}]} {
    %c0 = arith.constant 0 : index
    %c0_0 = arith.constant 0 : index
    %0 = vector.load %arg3[%c0, %c0_0] : memref<128x128xf32, #tpu.memory_space<vmem>>, vector<128x128xf32>
    %c0_1 = arith.constant 0 : index
    %c0_2 = arith.constant 0 : index
    %1 = vector.load %arg5[%c0_1, %c0_2] : memref<128x128xf32, #tpu.memory_space<vmem>>, vector<128x128xf32>
    %c0_3 = arith.constant 0 : index
    %c0_4 = arith.constant 0 : index
    %2 = vector.load %arg2[%c0_3, %c0_4] : memref<16x128xf32, #tpu.memory_space<vmem>>, vector<16x128xf32>
    %cst = arith.constant dense<0.000000e+00> : vector<16x128xf32>
    %3 = tpu.matmul %2, %0, %cst {dimension_numbers = #tpu.dot_dimension_numbers<[1], [0], [0], [1], [0, 0, 1, 1], [], []>} : vector<16x128xf32>, vector<128x128xf32>, vector<16x128xf32> -> vector<16x128xf32>
    %c0_5 = arith.constant 0 : index
    %c0_6 = arith.constant 0 : index
    %4 = vector.load %arg4[%c0_5, %c0_6] : memref<1x128xf32, #tpu.memory_space<vmem>>, vector<1x128xf32>
    %5 = vector.broadcast %4 : vector<1x128xf32> to vector<16x128xf32>
    %6 = arith.addf %3, %5 : vector<16x128xf32>
    %cst_7 = arith.constant 1.702000e+00 : f32
    %7 = vector.broadcast %cst_7 : f32 to vector<16x128xf32>
    %8 = arith.mulf %7, %6 : vector<16x128xf32>
    %9 = arith.negf %8 : vector<16x128xf32>
    %10 = math.exp %9 : vector<16x128xf32>
    %cst_8 = arith.constant 1.000000e+00 : f32
    %11 = vector.broadcast %cst_8 : f32 to vector<16x128xf32>
    %12 = arith.addf %11, %10 : vector<16x128xf32>
    %13 = arith.divf %11, %12 : vector<16x128xf32>
    %14 = arith.mulf %6, %13 : vector<16x128xf32>
    %cst_9 = arith.constant dense<0.000000e+00> : vector<16x128xf32>
    %15 = tpu.matmul %14, %1, %cst_9 {dimension_numbers = #tpu.dot_dimension_numbers<[1], [0], [0], [1], [0, 0, 1, 1], [], []>} : vector<16x128xf32>, vector<128x128xf32>, vector<16x128xf32> -> vector<16x128xf32>
    %c0_10 = arith.constant 0 : index
    %c0_11 = arith.constant 0 : index
    %16 = vector.load %arg6[%c0_10, %c0_11] : memref<1x128xf32, #tpu.memory_space<vmem>>, vector<1x128xf32>
    %17 = vector.broadcast %16 : vector<1x128xf32> to vector<16x128xf32>
    %18 = arith.addf %15, %17 : vector<16x128xf32>
    %c0_12 = arith.constant 0 : index
    %c0_13 = arith.constant 0 : index
    %19 = vector.load %arg7[%c0_12, %c0_13] : memref<16x128xf32, #tpu.memory_space<vmem>>, vector<16x128xf32>
    tpu.vector_store %arg7[%c0_12, %c0_13], %18 {strides = array<i32>} : memref<16x128xf32, #tpu.memory_space<vmem>>, vector<16x128xf32>,
    return
  }
  func.func @transform_0(%arg0: i32, %arg1: i32) -> (i32, i32) {
    %c0_i32 = arith.constant 0 : i32
    %c0_i32_0 = arith.constant 0 : i32
    return %arg0, %c0_i32 : i32, i32
  }
  func.func @transform_1(%arg0: i32, %arg1: i32) -> (i32, i32) {
    %c0_i32 = arith.constant 0 : i32
    %c0_i32_0 = arith.constant 0 : i32
    %c0_i32_1 = arith.constant 0 : i32
    return %c0_i32, %c0_i32_0 : i32, i32
  }
  func.func @transform_2(%arg0: i32, %arg1: i32) -> (i32, i32) {
    %c0_i32 = arith.constant 0 : i32
    %c0_i32_0 = arith.constant 0 : i32
    return %c0_i32, %arg1 : i32, i32
  }
  func.func @transform_3(%arg0: i32, %arg1: i32) -> (i32, i32) {
    %c0_i32 = arith.constant 0 : i32
    %c0_i32_0 = arith.constant 0 : i32
    %c0_i32_1 = arith.constant 0 : i32
    return %c0_i32, %c0_i32_0 : i32, i32
  }
  func.func @transform_4(%arg0: i32, %arg1: i32) -> (i32, i32) {
    %c0_i32 = arith.constant 0 : i32
    %c0_i32_0 = arith.constant 0 : i32
    %c0_i32_1 = arith.constant 0 : i32
    return %c0_i32, %c0_i32_0 : i32, i32
  }
  func.func @transform_5(%arg0: i32, %arg1: i32) -> (i32, i32) {
    %c0_i32 = arith.constant 0 : i32
    %c0_i32_0 = arith.constant 0 : i32
    return %arg0, %c0_i32 : i32, i32
  }
}

module attributes {stable_mosaic.version = 11 : i64} {
  func.func @kernel(%arg0: i32, %arg1: i32, %arg2: memref<16x128xf32, #tpu.memory_space<vmem>>, %arg3: memref<128x128xf32, #tpu.memory_space<vmem>>, %arg4: memref<1x128xf32, #tpu.memory_space<vmem>>, %arg5: memref<128x128xf32, #tpu.memory_space<vmem>>, %arg6: memref<1x128xf32, #tpu.memory_space<vmem>>, %arg7: memref<16x128xf32, #tpu.memory_space<vmem>>) attributes {dimension_semantics = [#tpu.dimension_semantics<parallel>, #tpu.dimension_semantics<arbitrary>], iteration_bounds = array<i64: 1, 1>, scalar_prefetch = 0 : i64, scratch_operands = 0 : i64, tpu.core_type = #tpu.core_type<tc>, window_params = [{transform_indices = @transform_0, window_bounds = array<i64: 16, 128>}, {pipeline_mode = #tpu.pipeline_mode<synchronous>, transform_indices = @transform_1, window_bounds = array<i64: 128, 128>}, {transform_indices = @transform_2, window_bounds = array<i64: 1, 128>}, {pipeline_mode = #tpu.pipeline_mode<synchronous>, transform_indices = @transform_3, window_bounds = array<i64: 128, 128>}, {pipeline_mode = #tpu.pipeline_mode<synchronous>, transform_indices = @transform_4, window_bounds = array<i64: 1, 128>}, {transform_indices = @transform_5, window_bounds = array<i64: 16, 128>}]} {
    %c0 = arith.constant 0 : index
    %c0_0 = arith.constant 0 : index
    %0 = vector.load %arg3[%c0, %c0_0] : memref<128x128xf32, #tpu.memory_space<vmem>>, vector<128x128xf32>
    %c0_1 = arith.constant 0 : index
    %c0_2 = arith.constant 0 : index
    %1 = vector.load %arg5[%c0_1, %c0_2] : memref<128x128xf32, #tpu.memory_space<vmem>>, vector<128x128xf32>
    %c0_3 = arith.constant 0 : index
    %c0_4 = arith.constant 0 : index
    %2 = vector.load %arg2[%c0_3, %c0_4] : memref<16x128xf32, #tpu.memory_space<vmem>>, vector<16x128xf32>
    %cst = arith.constant dense<0.000000e+00> : vector<16x128xf32>
    %3 = tpu.matmul %2, %0, %cst {dimension_numbers = #tpu.dot_dimension_numbers<[1], [0], [0], [1], [0, 0, 1, 1], [], []>} : vector<16x128xf32>, vector<128x128xf32>, vector<16x128xf32> -> vector<16x128xf32>
    %c0_5 = arith.constant 0 : index
    %c0_6 = arith.constant 0 : index
    %4 = vector.load %arg4[%c0_5, %c0_6] : memref<1x128xf32, #tpu.memory_space<vmem>>, vector<1x128xf32>
    %5 = vector.broadcast %4 : vector<1x128xf32> to vector<16x128xf32>
    %6 = arith.addf %3, %5 : vector<16x128xf32>
    %cst_7 = arith.constant 1.702000e+00 : f32
    %7 = vector.broadcast %cst_7 : f32 to vector<16x128xf32>
    %8 = arith.mulf %7, %6 : vector<16x128xf32>
    %9 = arith.negf %8 : vector<16x128xf32>
    %10 = math.exp %9 : vector<16x128xf32>
    %cst_8 = arith.constant 1.000000e+00 : f32
    %11 = vector.broadcast %cst_8 : f32 to vector<16x128xf32>
    %12 = arith.addf %11, %10 : vector<16x128xf32>
    %13 = arith.divf %11, %12 : vector<16x128xf32>
    %14 = arith.mulf %6, %13 : vector<16x128xf32>
    %cst_9 = arith.constant dense<0.000000e+00> : vector<16x128xf32>
    %15 = tpu.matmul %14, %1, %cst_9 {dimension_numbers = #tpu.dot_dimension_numbers<[1], [0], [0], [1], [0, 0, 1, 1], [], []>} : vector<16x128xf32>, vector<128x128xf32>, vector<16x128xf32> -> vector<16x128xf32>
    %c0_10 = arith.constant 0 : index
    %c0_11 = arith.constant 0 : index
    %16 = vector.load %arg6[%c0_10, %c0_11] : memref<1x128xf32, #tpu.memory_space<vmem>>, vector<1x128xf32>
    %17 = vector.broadcast %16 : vector<1x128xf32> to vector<16x128xf32>
    %18 = arith.addf %15, %17 : vector<16x128xf32>
    %c0_12 = arith.constant 0 : index
    %c0_13 = arith.constant 0 : index
    %19 = vector.load %arg7[%c0_12, %c0_13] : memref<16x128xf32, #tpu.memory_space<vmem>>, vector<16x128xf32>
    tpu.vector_store %arg7[%c0_12, %c0_13], %18 {strides = array<i32>} : memref<16x128xf32, #tpu.memory_space<vmem>>, vector<16x128xf32>,
    return
  }
  func.func @transform_0(%arg0: i32, %arg1: i32) -> (i32, i32) {
    %c0_i32 = arith.constant 0 : i32
    %c0_i32_0 = arith.constant 0 : i32
    return %arg0, %c0_i32 : i32, i32
  }
  func.func @transform_1(%arg0: i32, %arg1: i32) -> (i32, i32) {
    %c0_i32 = arith.constant 0 : i32
    %c0_i32_0 = arith.constant 0 : i32
    %c0_i32_1 = arith.constant 0 : i32
    return %c0_i32, %c0_i32_0 : i32, i32
  }
  func.func @transform_2(%arg0: i32, %arg1: i32) -> (i32, i32) {
    %c0_i32 = arith.constant 0 : i32
    %c0_i32_0 = arith.constant 0 : i32
    return %c0_i32, %arg1 : i32, i32
  }
  func.func @transform_3(%arg0: i32, %arg1: i32) -> (i32, i32) {
    %c0_i32 = arith.constant 0 : i32
    %c0_i32_0 = arith.constant 0 : i32
    %c0_i32_1 = arith.constant 0 : i32
    return %c0_i32, %c0_i32_0 : i32, i32
  }
  func.func @transform_4(%arg0: i32, %arg1: i32) -> (i32, i32) {
    %c0_i32 = arith.constant 0 : i32
    %c0_i32_0 = arith.constant 0 : i32
    %c0_i32_1 = arith.constant 0 : i32
    return %c0_i32, %c0_i32_0 : i32, i32
  }
  func.func @transform_5(%arg0: i32, %arg1: i32) -> (i32, i32) {
    %c0_i32 = arith.constant 0 : i32
    %c0_i32_0 = arith.constant 0 : i32
    return %arg0, %c0_i32 : i32, i32
  }
}

</mosaic_0001>

<bundles_post_ra>
// kernel: tpu_custom_call.1
= control target key start
LH: loop header
LB: loop body
LE: loop exit
PB: predicated region body
PF: predicated region fallthrough
CT: control target
= control target key end

     0   :  { %10 = vsyncpa [#allocation3], 0  ;;  %s438_s0 = inlined_call_operand.hbm [shape: f32[16,128], index: 0, kind: input, shape index: {}]   ;;  %s439_s1 = inlined_call_operand.hbm [shape: f32[128,128], index: 1, kind: input, shape index: {}]   ;;  %s440_s2 = inlined_call_operand.vmem [shape: f32[1,128], index: 2, kind: input, shape index: {}]   ;;  %s441_s3 = inlined_call_operand.hbm [shape: f32[128,128], index: 3, kind: input, shape index: {}]   ;;  %s442_s4 = inlined_call_operand.vmem [shape: f32[1,128], index: 4, kind: input, shape index: {}]   ;;  %s443_s5 = inlined_call_operand.hbm [shape: f32[16,128], index: 5, kind: output, shape index: {}]  }
   0x1   :  { %11 = vsyncpa [#allocation6], 0 }
   0x2   :  { %12 = vsyncpa [#allocation4], 0  ;;  %s30_s20 = sshll.u32 %s439_s1, 4  ;;  %s372_s21 = smov [#allocation5]   ;;  %s31_s20 = int_to_ptr.hbm [resolvable:$true] %s30_s20 }
   0x3   :  { %s32_s22 = sshll.u32 %s372_s21, 4  ;;  %s17_s25 = sshll.u32 %s438_s0, 4  ;;  %s33_s22 = int_to_ptr.vmem [resolvable:$true] %s32_s22  ;;  %s18_s25 = int_to_ptr.hbm [resolvable:$true] %s17_s25 }
   0x4   :  { %s373_s26 = smov 128   ;;  %s374_s27 = smov 8  }
   0x5   :  { %38 = dma.hbm_to_vmem [thread:$0]  %s31_s20, 2048, %s33_s22, [#allocation6], %s373_s26, %s373_s26, %s374_s27  }
   0x6   :  { %s375_s28 = smov [#allocation2]   ;;  %s45_s1 = sshll.u32 %s441_s3, 4  ;;  %s46_s1 = int_to_ptr.hbm [resolvable:$true] %s45_s1 }
   0x7   :  { %s19_s29 = sshll.u32 %s375_s28, 4  ;;  %s376_s0 = smov [#allocation7]   ;;  %s20_s29 = int_to_ptr.vmem [resolvable:$true] %s19_s29 }
   0x8   :  { %25 = dma.hbm_to_vmem [thread:$0]  %s18_s25, 256, %s20_s29, [#allocation3], %s373_s26, %s373_s26, %s374_s27  }
   0x9   :  { %s47_s7 = sshll.u32 %s376_s0, 4  ;;  %s48_s7 = int_to_ptr.vmem [resolvable:$true] %s47_s7 }
   0xa   :  { %53 = dma.hbm_to_vmem [thread:$0]  %s46_s1, 2048, %s48_s7, [#allocation6], %s373_s26, %s373_s26, %s374_s27  }
   0xb   :  { %366 = dma.done.wait [#allocation3], 256  }
   0xc   :  { %367 = vsyncadd [#allocation3], 4294967040 }
   0xd   :  { %368 = dma.done.wait [#allocation6], 4096  }
   0xe   :  { %369 = vsyncadd [#allocation6], 4294963200  ;;  %v83_v0 = vld [vmem:[#allocation5 + $0x78] sm:$0xff]  ;;  %v82_v1 = vld [vmem:[#allocation5 + $0x70] sm:$0xff]  ;;  %s377_s10 = smov [#allocation8]   ;;  %s206_s14 = sshll.u32 %s443_s5, 4  ;;  %s207_s14 = int_to_ptr.hbm [resolvable:$true] %s206_s14 }
   0xf   :  { %106 = vmatpush.msra.mxu0 %v83_v0  ;;  %222 = vmatpush.msra.mxu2 %v83_v0  ;;  %v81_v2 = vld [vmem:[#allocation5 + $0x68] sm:$0xff]  ;;  %v80_v3 = vld [vmem:[#allocation5 + $0x60] sm:$0xff]  ;;  %v79_v4 = vld [vmem:[#allocation5 + $0x58] sm:$0xff]  ;;  %s204_s11 = sshll.u32 %s377_s10, 4  ;;  %s205_s11 = int_to_ptr.vmem [resolvable:$true] %s204_s11 }
  0x10   :  { %v78_v5 = vld [vmem:[#allocation5 + $0x50] sm:$0xff]  ;;  %v77_v6 = vld [vmem:[#allocation5 + $0x48] sm:$0xff]  ;;  %v76_v7 = vld [vmem:[#allocation5 + $0x40] sm:$0xff] }
  0x11   :  { %107 = vmatpush.msra.mxu0 %v82_v1  ;;  %223 = vmatpush.msra.mxu2 %v82_v1  ;;  %v75_v8 = vld [vmem:[#allocation5 + $0x38] sm:$0xff]  ;;  %v74_v9 = vld [vmem:[#allocation5 + $0x30] sm:$0xff]  ;;  %v73_v10 = vld [vmem:[#allocation5 + $0x28] sm:$0xff] }
  0x12   :  { %v72_v11 = vld [vmem:[#allocation5 + $0x20] sm:$0xff]  ;;  %v71_v12 = vld [vmem:[#allocation5 + $0x18] sm:$0xff]  ;;  %v70_v13 = vld [vmem:[#allocation5 + $0x10] sm:$0xff] }
  0x13   :  { %108 = vmatpush.msra.mxu0 %v81_v2  ;;  %224 = vmatpush.msra.mxu2 %v81_v2  ;;  %v69_v14 = vld [vmem:[#allocation5 + $0x8] sm:$0xff]  ;;  %v68_v15 = vld [vmem:[#allocation5] sm:$0xff]  ;;  %v100_v16 = vld [vmem:[#allocation2] sm:$0xff] }
  0x14   :  { %v101_v17 = vld [vmem:[#allocation2 + $0x8] sm:$0xff]  ;;  %v98_v19 = vld [vmem:[#allocation7 + $0x70] sm:$0xff]  ;;  %v97_v20 = vld [vmem:[#allocation7 + $0x68] sm:$0xff] }
  0x15   :  { %109 = vmatpush.msra.mxu0 %v80_v3  ;;  %225 = vmatpush.msra.mxu2 %v80_v3  ;;  %v99_v18 = vld [vmem:[#allocation7 + $0x78] sm:$0xff]  ;;  %v96_v21 = vld [vmem:[#allocation7 + $0x60] sm:$0xff]  ;;  %v94_v23 = vld [vmem:[#allocation7 + $0x50] sm:$0xff] }
  0x16   :  { %175 = vmatpush.msra.mxu1 %v99_v18  ;;  %238 = vmatpush.msra.mxu3 %v99_v18  ;;  %v95_v22 = vld [vmem:[#allocation7 + $0x58] sm:$0xff]  ;;  %v93_v24 = vld [vmem:[#allocation7 + $0x48] sm:$0xff]  ;;  %v92_v25 = vld [vmem:[#allocation7 + $0x40] sm:$0xff] }
  0x17   :  { %110 = vmatpush.msra.mxu0 %v79_v4  ;;  %226 = vmatpush.msra.mxu2 %v79_v4  ;;  %v91_v26 = vld [vmem:[#allocation7 + $0x38] sm:$0xff]  ;;  %v90_v27 = vld [vmem:[#allocation7 + $0x30] sm:$0xff]  ;;  %v89_v28 = vld [vmem:[#allocation7 + $0x28] sm:$0xff] }
  0x18   :  { %176 = vmatpush.msra.mxu1 %v98_v19  ;;  %239 = vmatpush.msra.mxu3 %v98_v19  ;;  %v88_v29 = vld [vmem:[#allocation7 + $0x20] sm:$0xff]  ;;  %v87_v30 = vld [vmem:[#allocation7 + $0x18] sm:$0xff]  ;;  %v86_v31 = vld [vmem:[#allocation7 + $0x10] sm:$0xff] }
  0x19   :  { %111 = vmatpush.msra.mxu0 %v78_v5  ;;  %227 = vmatpush.msra.mxu2 %v78_v5  ;;  %v260_v32 = vld [vmem:[%s440_s2] ss:$0 sm:$0xff]  ;;  %v85_v33 = vld [vmem:[#allocation7 + $0x8] sm:$0xff]  ;;  %v84_v34 = vld [vmem:[#allocation7] sm:$0xff] }
  0x1a   :  { %177 = vmatpush.msra.mxu1 %v97_v20  ;;  %240 = vmatpush.msra.mxu3 %v97_v20  ;;  %v261_v5 = vld [vmem:[%s442_s4] ss:$0 sm:$0xff] }
  0x1b   :  { %112 = vmatpush.msra.mxu0 %v77_v6  ;;  %228 = vmatpush.msra.mxu2 %v77_v6 }
  0x1c   :  { %178 = vmatpush.msra.mxu1 %v96_v21  ;;  %241 = vmatpush.msra.mxu3 %v96_v21 }
  0x1d   :  { %113 = vmatpush.msra.mxu0 %v76_v7  ;;  %229 = vmatpush.msra.mxu2 %v76_v7 }
  0x1e   :  { %179 = vmatpush.msra.mxu1 %v95_v22  ;;  %242 = vmatpush.msra.mxu3 %v95_v22 }
  0x1f   :  { %114 = vmatpush.msra.mxu0 %v75_v8  ;;  %230 = vmatpush.msra.mxu2 %v75_v8 }
  0x20   :  { %180 = vmatpush.msra.mxu1 %v94_v23  ;;  %243 = vmatpush.msra.mxu3 %v94_v23 }
  0x21   :  { %115 = vmatpush.msra.mxu0 %v74_v9  ;;  %231 = vmatpush.msra.mxu2 %v74_v9 }
  0x22   :  { %181 = vmatpush.msra.mxu1 %v93_v24  ;;  %244 = vmatpush.msra.mxu3 %v93_v24 }
  0x23   :  { %116 = vmatpush.msra.mxu0 %v73_v10  ;;  %232 = vmatpush.msra.mxu2 %v73_v10 }
  0x24   :  { %182 = vmatpush.msra.mxu1 %v92_v25  ;;  %245 = vmatpush.msra.mxu3 %v92_v25 }
  0x25   :  { %117 = vmatpush.msra.mxu0 %v72_v11  ;;  %233 = vmatpush.msra.mxu2 %v72_v11 }
  0x26   :  { %183 = vmatpush.msra.mxu1 %v91_v26  ;;  %246 = vmatpush.msra.mxu3 %v91_v26 }
  0x27   :  { %118 = vmatpush.msra.mxu0 %v71_v12  ;;  %234 = vmatpush.msra.mxu2 %v71_v12 }
  0x28   :  { %184 = vmatpush.msra.mxu1 %v90_v27  ;;  %247 = vmatpush.msra.mxu3 %v90_v27 }
  0x29   :  { %119 = vmatpush.msra.mxu0 %v70_v13  ;;  %235 = vmatpush.msra.mxu2 %v70_v13 }
  0x2a   :  { %185 = vmatpush.msra.mxu1 %v89_v28  ;;  %248 = vmatpush.msra.mxu3 %v89_v28 }
  0x2b   :  { %120 = vmatpush.msra.mxu0 %v69_v14  ;;  %236 = vmatpush.msra.mxu2 %v69_v14 }
  0x2c   :  { %186 = vmatpush.msra.mxu1 %v88_v29  ;;  %249 = vmatpush.msra.mxu3 %v88_v29 }
  0x2d   :  { %121 = vmatpush.msra.mxu0 %v68_v15  ;;  %237 = vmatpush.msra.mxu2 %v68_v15 }
  0x2e   :  { %122 = vmatmul.f32.vlgmr.msra.gmra.mxu0 %v100_v16  ;;  %125 = vmatmul.f32.vlgmr.msra.gmra.mxu2 %v101_v17 }
  0x2f   :  { %187 = vmatpush.msra.mxu1 %v87_v30  ;;  %250 = vmatpush.msra.mxu3 %v87_v30 }
  0x31   :  { %188 = vmatpush.msra.mxu1 %v86_v31  ;;  %251 = vmatpush.msra.mxu3 %v86_v31 }
  0x33   :  { %189 = vmatpush.msra.mxu1 %v85_v33  ;;  %252 = vmatpush.msra.mxu3 %v85_v33 }
  0x35   :  { %190 = vmatpush.msra.mxu1 %v84_v34  ;;  %253 = vmatpush.msra.mxu3 %v84_v34 }
  0xab   :  { %v123_v35 = vpop.f32.mrf.mxu0 }
  0xac   :  { %v124_v36 = vadd.f32 %v260_v32, %v123_v35 }
  0xae   :  { %v220_v37 = vmul.f32 -1.702, %v124_v36 }
  0xb0   :  { %v133_v38 = vmul.f32 1.442695, %v220_v37 }
  0xb1   :  { %v126_v39 = vpop.f32.mrf.mxu2 }
  0xb2   :  { %262 = vpow2.f32 %v133_v38  ;;  %v127_v40 = vadd.f32 %v260_v32, %v126_v39 }
  0xb4   :  { %v221_v41 = vmul.f32 -1.702, %v127_v40 }
  0xb6   :  { %v135_v42 = vmul.f32 1.442695, %v221_v41 }
  0xb8   :  { %v263_v43 = vpop.eup %262  ;;  %264 = vpow2.f32 %v135_v42 }
  0xb9   :  { %v137_v44 = vadd.f32 1.0, %v263_v43 }
  0xbb   :  { %266 = vrcp.f32 %v137_v44  ;;  %v150_v49 = vand.u32 2147483648, %v137_v44  ;;  %vm144_vm0 = vweird.f32 %v137_v44  ;;  %v148_v51 = vand.u32 2147483647, %v137_v44 }
  0xbd   :  { %v151_v54 = vor.u32 1.1754944e-38, %v150_v49  ;;  %vm149_vm3 = vcmp.eq.f32.partialorder %v148_v51, 8.507059e+37 }
  0xbe   :  { %v265_v45 = vpop.eup %264 }
  0xbf   :  { %v138_v46 = vadd.f32 1.0, %v265_v45 }
  0xc1   :  { %v267_v47 = vpop.eup %266  ;;  %268 = vrcp.f32 %v138_v46  ;;  %v165_v60 = vand.u32 2147483648, %v138_v46  ;;  %v163_v63 = vand.u32 2147483647, %v138_v46  ;;  %vm159_vm5 = vweird.f32 %v138_v46 }
  0xc2   :  { %v140_v48 = vmul.f32 %v267_v47, %v137_v44  ;;  %vm145_vm1 = vweird.f32 %v267_v47 }
  0xc3   :  { %vm146_vm2 = vmor %vm144_vm0, %vm145_vm1  ;;  %v166_v1 = vor.u32 1.1754944e-38, %v165_v60  ;;  %vm164_vm7 = vcmp.eq.f32.partialorder %v163_v63, 8.507059e+37 }
  0xc4   :  { %v141_v50 = vsub.f32 1.0, %v140_v48 }
  0xc6   :  { %v142_v52 = vmul.f32 %v267_v47, %v141_v50 }
  0xc7   :  { %v269_v53 = vpop.eup %268 }
  0xc8   :  { %v143_v55 = vadd.f32 %v267_v47, %v142_v52  ;;  %v155_v56 = vmul.f32 %v269_v53, %v138_v46  ;;  %vm160_vm4 = vweird.f32 %v269_v53 }
  0xc9   :  { %vm161_vm6 = vmor %vm159_vm5, %vm160_vm4 }
  0xca   :  { %v147_v57 = vsel %vm146_vm2, %v267_v47, %v143_v55  ;;  %v156_v58 = vsub.f32 1.0, %v155_v56 }
  0xcb   :  { %v152_v59 = vsel %vm149_vm3, %v151_v54, %v147_v57 }
  0xcc   :  { %v169_v61 = vmul.f32 %v152_v59, %v124_v36  ;;  %v157_v62 = vmul.f32 %v269_v53, %v156_v58 }
  0xce   :  { %191 = vmatmul.f32.vlgmr.msra.gmra.mxu1 %v169_v61  ;;  %v158_v0 = vadd.f32 %v269_v53, %v157_v62 }
  0xd0   :  { %v162_v2 = vsel %vm161_vm6, %v269_v53, %v158_v0 }
  0xd1   :  { %v167_v3 = vsel %vm164_vm7, %v166_v1, %v162_v2 }
  0xd2   :  { %v170_v4 = vmul.f32 %v167_v3, %v127_v40 }
  0xd4   :  { %194 = vmatmul.f32.vlgmr.msra.gmra.mxu3 %v170_v4 }
 0x14b   :  { %v192_v6 = vpop.f32.mrf.mxu1 }
 0x14c   :  { %v193_v7 = vadd.f32 %v261_v5, %v192_v6 }
 0x14e   :  { %198 = vst [vmem:[#allocation8] sm:$0xff] %v193_v7 }
 0x157   :  { %v195_v8 = vpop.f32.mrf.mxu3 }
 0x158   :  { %v196_v9 = vadd.f32 %v261_v5, %v195_v8 }
 0x15a   :  { %199 = vst [vmem:[#allocation8 + $0x8] sm:$0xff] %v196_v9 }
 0x15b   :  { %212 = dma.vmem_to_hbm [thread:$0]  %s205_s11, 256, %s207_s14, [#allocation4], %s373_s26, %s373_s26, %s374_s27  }
 0x15c   :  { %370 = dma.done.wait [#allocation4], 256  }
 0x15d   :  { %371 = vsyncadd [#allocation4], 4294967040 }
 0x15e   :  { %217 = vsyncpa [#allocation3], 1 }
 0x15f   :  { %218 = vsyncpa [#allocation6], 1 }
 0x160   :  { %219 = vsyncpa [#allocation4], 1 }

// kernel: tpu_custom_call.1
= control target key start
LH: loop header
LB: loop body
LE: loop exit
PB: predicated region body
PF: predicated region fallthrough
CT: control target
= control target key end

     0   :  { %10 = vsyncpa [#allocation3], 0  ;;  %s438_s0 = inlined_call_operand.hbm [shape: f32[16,128], index: 0, kind: input, shape index: {}]   ;;  %s439_s1 = inlined_call_operand.hbm [shape: f32[128,128], index: 1, kind: input, shape index: {}]   ;;  %s440_s2 = inlined_call_operand.vmem [shape: f32[1,128], index: 2, kind: input, shape index: {}]   ;;  %s441_s3 = inlined_call_operand.hbm [shape: f32[128,128], index: 3, kind: input, shape index: {}]   ;;  %s442_s4 = inlined_call_operand.vmem [shape: f32[1,128], index: 4, kind: input, shape index: {}]   ;;  %s443_s5 = inlined_call_operand.hbm [shape: f32[16,128], index: 5, kind: output, shape index: {}]  }
   0x1   :  { %11 = vsyncpa [#allocation6], 0 }
   0x2   :  { %12 = vsyncpa [#allocation4], 0  ;;  %s30_s20 = sshll.u32 %s439_s1, 4  ;;  %s372_s21 = smov [#allocation5]   ;;  %s31_s20 = int_to_ptr.hbm [resolvable:$true] %s30_s20 }
   0x3   :  { %s32_s22 = sshll.u32 %s372_s21, 4  ;;  %s17_s25 = sshll.u32 %s438_s0, 4  ;;  %s33_s22 = int_to_ptr.vmem [resolvable:$true] %s32_s22  ;;  %s18_s25 = int_to_ptr.hbm [resolvable:$true] %s17_s25 }
   0x4   :  { %s373_s26 = smov 128   ;;  %s374_s27 = smov 8  }
   0x5   :  { %38 = dma.hbm_to_vmem [thread:$0]  %s31_s20, 2048, %s33_s22, [#allocation6], %s373_s26, %s373_s26, %s374_s27  }
   0x6   :  { %s375_s28 = smov [#allocation2]   ;;  %s45_s1 = sshll.u32 %s441_s3, 4  ;;  %s46_s1 = int_to_ptr.hbm [resolvable:$true] %s45_s1 }
   0x7   :  { %s19_s29 = sshll.u32 %s375_s28, 4  ;;  %s376_s0 = smov [#allocation7]   ;;  %s20_s29 = int_to_ptr.vmem [resolvable:$true] %s19_s29 }
   0x8   :  { %25 = dma.hbm_to_vmem [thread:$0]  %s18_s25, 256, %s20_s29, [#allocation3], %s373_s26, %s373_s26, %s374_s27  }
   0x9   :  { %s47_s7 = sshll.u32 %s376_s0, 4  ;;  %s48_s7 = int_to_ptr.vmem [resolvable:$true] %s47_s7 }
   0xa   :  { %53 = dma.hbm_to_vmem [thread:$0]  %s46_s1, 2048, %s48_s7, [#allocation6], %s373_s26, %s373_s26, %s374_s27  }
   0xb   :  { %366 = dma.done.wait [#allocation3], 256  }
   0xc   :  { %367 = vsyncadd [#allocation3], 4294967040 }
   0xd   :  { %368 = dma.done.wait [#allocation6], 4096  }
   0xe   :  { %369 = vsyncadd [#allocation6], 4294963200  ;;  %v83_v0 = vld [vmem:[#allocation5 + $0x78] sm:$0xff]  ;;  %v82_v1 = vld [vmem:[#allocation5 + $0x70] sm:$0xff]  ;;  %s377_s10 = smov [#allocation8]   ;;  %s206_s14 = sshll.u32 %s443_s5, 4  ;;  %s207_s14 = int_to_ptr.hbm [resolvable:$true] %s206_s14 }
   0xf   :  { %106 = vmatpush.msra.mxu0 %v83_v0  ;;  %222 = vmatpush.msra.mxu2 %v83_v0  ;;  %v81_v2 = vld [vmem:[#allocation5 + $0x68] sm:$0xff]  ;;  %v80_v3 = vld [vmem:[#allocation5 + $0x60] sm:$0xff]  ;;  %v79_v4 = vld [vmem:[#allocation5 + $0x58] sm:$0xff]  ;;  %s204_s11 = sshll.u32 %s377_s10, 4  ;;  %s205_s11 = int_to_ptr.vmem [resolvable:$true] %s204_s11 }
  0x10   :  { %v78_v5 = vld [vmem:[#allocation5 + $0x50] sm:$0xff]  ;;  %v77_v6 = vld [vmem:[#allocation5 + $0x48] sm:$0xff]  ;;  %v76_v7 = vld [vmem:[#allocation5 + $0x40] sm:$0xff] }
  0x11   :  { %107 = vmatpush.msra.mxu0 %v82_v1  ;;  %223 = vmatpush.msra.mxu2 %v82_v1  ;;  %v75_v8 = vld [vmem:[#allocation5 + $0x38] sm:$0xff]  ;;  %v74_v9 = vld [vmem:[#allocation5 + $0x30] sm:$0xff]  ;;  %v73_v10 = vld [vmem:[#allocation5 + $0x28] sm:$0xff] }
  0x12   :  { %v72_v11 = vld [vmem:[#allocation5 + $0x20] sm:$0xff]  ;;  %v71_v12 = vld [vmem:[#allocation5 + $0x18] sm:$0xff]  ;;  %v70_v13 = vld [vmem:[#allocation5 + $0x10] sm:$0xff] }
  0x13   :  { %108 = vmatpush.msra.mxu0 %v81_v2  ;;  %224 = vmatpush.msra.mxu2 %v81_v2  ;;  %v69_v14 = vld [vmem:[#allocation5 + $0x8] sm:$0xff]  ;;  %v68_v15 = vld [vmem:[#allocation5] sm:$0xff]  ;;  %v100_v16 = vld [vmem:[#allocation2] sm:$0xff] }
  0x14   :  { %v101_v17 = vld [vmem:[#allocation2 + $0x8] sm:$0xff]  ;;  %v98_v19 = vld [vmem:[#allocation7 + $0x70] sm:$0xff]  ;;  %v97_v20 = vld [vmem:[#allocation7 + $0x68] sm:$0xff] }
  0x15   :  { %109 = vmatpush.msra.mxu0 %v80_v3  ;;  %225 = vmatpush.msra.mxu2 %v80_v3  ;;  %v99_v18 = vld [vmem:[#allocation7 + $0x78] sm:$0xff]  ;;  %v96_v21 = vld [vmem:[#allocation7 + $0x60] sm:$0xff]  ;;  %v94_v23 = vld [vmem:[#allocation7 + $0x50] sm:$0xff] }
  0x16   :  { %175 = vmatpush.msra.mxu1 %v99_v18  ;;  %238 = vmatpush.msra.mxu3 %v99_v18  ;;  %v95_v22 = vld [vmem:[#allocation7 + $0x58] sm:$0xff]  ;;  %v93_v24 = vld [vmem:[#allocation7 + $0x48] sm:$0xff]  ;;  %v92_v25 = vld [vmem:[#allocation7 + $0x40] sm:$0xff] }
  0x17   :  { %110 = vmatpush.msra.mxu0 %v79_v4  ;;  %226 = vmatpush.msra.mxu2 %v79_v4  ;;  %v91_v26 = vld [vmem:[#allocation7 + $0x38] sm:$0xff]  ;;  %v90_v27 = vld [vmem:[#allocation7 + $0x30] sm:$0xff]  ;;  %v89_v28 = vld [vmem:[#allocation7 + $0x28] sm:$0xff] }
  0x18   :  { %176 = vmatpush.msra.mxu1 %v98_v19  ;;  %239 = vmatpush.msra.mxu3 %v98_v19  ;;  %v88_v29 = vld [vmem:[#allocation7 + $0x20] sm:$0xff]  ;;  %v87_v30 = vld [vmem:[#allocation7 + $0x18] sm:$0xff]  ;;  %v86_v31 = vld [vmem:[#allocation7 + $0x10] sm:$0xff] }
  0x19   :  { %111 = vmatpush.msra.mxu0 %v78_v5  ;;  %227 = vmatpush.msra.mxu2 %v78_v5  ;;  %v260_v32 = vld [vmem:[%s440_s2] ss:$0 sm:$0xff]  ;;  %v85_v33 = vld [vmem:[#allocation7 + $0x8] sm:$0xff]  ;;  %v84_v34 = vld [vmem:[#allocation7] sm:$0xff] }
  0x1a   :  { %177 = vmatpush.msra.mxu1 %v97_v20  ;;  %240 = vmatpush.msra.mxu3 %v97_v20  ;;  %v261_v5 = vld [vmem:[%s442_s4] ss:$0 sm:$0xff] }
  0x1b   :  { %112 = vmatpush.msra.mxu0 %v77_v6  ;;  %228 = vmatpush.msra.mxu2 %v77_v6 }
  0x1c   :  { %178 = vmatpush.msra.mxu1 %v96_v21  ;;  %241 = vmatpush.msra.mxu3 %v96_v21 }
  0x1d   :  { %113 = vmatpush.msra.mxu0 %v76_v7  ;;  %229 = vmatpush.msra.mxu2 %v76_v7 }
  0x1e   :  { %179 = vmatpush.msra.mxu1 %v95_v22  ;;  %242 = vmatpush.msra.mxu3 %v95_v22 }
  0x1f   :  { %114 = vmatpush.msra.mxu0 %v75_v8  ;;  %230 = vmatpush.msra.mxu2 %v75_v8 }
  0x20   :  { %180 = vmatpush.msra.mxu1 %v94_v23  ;;  %243 = vmatpush.msra.mxu3 %v94_v23 }
  0x21   :  { %115 = vmatpush.msra.mxu0 %v74_v9  ;;  %231 = vmatpush.msra.mxu2 %v74_v9 }
  0x22   :  { %181 = vmatpush.msra.mxu1 %v93_v24  ;;  %244 = vmatpush.msra.mxu3 %v93_v24 }
  0x23   :  { %116 = vmatpush.msra.mxu0 %v73_v10  ;;  %232 = vmatpush.msra.mxu2 %v73_v10 }
  0x24   :  { %182 = vmatpush.msra.mxu1 %v92_v25  ;;  %245 = vmatpush.msra.mxu3 %v92_v25 }
  0x25   :  { %117 = vmatpush.msra.mxu0 %v72_v11  ;;  %233 = vmatpush.msra.mxu2 %v72_v11 }
  0x26   :  { %183 = vmatpush.msra.mxu1 %v91_v26  ;;  %246 = vmatpush.msra.mxu3 %v91_v26 }
  0x27   :  { %118 = vmatpush.msra.mxu0 %v71_v12  ;;  %234 = vmatpush.msra.mxu2 %v71_v12 }
  0x28   :  { %184 = vmatpush.msra.mxu1 %v90_v27  ;;  %247 = vmatpush.msra.mxu3 %v90_v27 }
  0x29   :  { %119 = vmatpush.msra.mxu0 %v70_v13  ;;  %235 = vmatpush.msra.mxu2 %v70_v13 }
  0x2a   :  { %185 = vmatpush.msra.mxu1 %v89_v28  ;;  %248 = vmatpush.msra.mxu3 %v89_v28 }
  0x2b   :  { %120 = vmatpush.msra.mxu0 %v69_v14  ;;  %236 = vmatpush.msra.mxu2 %v69_v14 }
  0x2c   :  { %186 = vmatpush.msra.mxu1 %v88_v29  ;;  %249 = vmatpush.msra.mxu3 %v88_v29 }
  0x2d   :  { %121 = vmatpush.msra.mxu0 %v68_v15  ;;  %237 = vmatpush.msra.mxu2 %v68_v15 }
  0x2e   :  { %122 = vmatmul.f32.vlgmr.msra.gmra.mxu0 %v100_v16  ;;  %125 = vmatmul.f32.vlgmr.msra.gmra.mxu2 %v101_v17 }
  0x2f   :  { %187 = vmatpush.msra.mxu1 %v87_v30  ;;  %250 = vmatpush.msra.mxu3 %v87_v30 }
  0x31   :  { %188 = vmatpush.msra.mxu1 %v86_v31  ;;  %251 = vmatpush.msra.mxu3 %v86_v31 }
  0x33   :  { %189 = vmatpush.msra.mxu1 %v85_v33  ;;  %252 = vmatpush.msra.mxu3 %v85_v33 }
  0x35   :  { %190 = vmatpush.msra.mxu1 %v84_v34  ;;  %253 = vmatpush.msra.mxu3 %v84_v34 }
  0xab   :  { %v123_v35 = vpop.f32.mrf.mxu0 }
  0xac   :  { %v124_v36 = vadd.f32 %v260_v32, %v123_v35 }
  0xae   :  { %v220_v37 = vmul.f32 -1.702, %v124_v36 }
  0xb0   :  { %v133_v38 = vmul.f32 1.442695, %v220_v37 }
  0xb1   :  { %v126_v39 = vpop.f32.mrf.mxu2 }
  0xb2   :  { %262 = vpow2.f32 %v133_v38  ;;  %v127_v40 = vadd.f32 %v260_v32, %v126_v39 }
  0xb4   :  { %v221_v41 = vmul.f32 -1.702, %v127_v40 }
  0xb6   :  { %v135_v42 = vmul.f32 1.442695, %v221_v41 }
  0xb8   :  { %v263_v43 = vpop.eup %262  ;;  %264 = vpow2.f32 %v135_v42 }
  0xb9   :  { %v137_v44 = vadd.f32 1.0, %v263_v43 }
  0xbb   :  { %266 = vrcp.f32 %v137_v44  ;;  %v150_v49 = vand.u32 2147483648, %v137_v44  ;;  %vm144_vm0 = vweird.f32 %v137_v44  ;;  %v148_v51 = vand.u32 2147483647, %v137_v44 }
  0xbd   :  { %v151_v54 = vor.u32 1.1754944e-38, %v150_v49  ;;  %vm149_vm3 = vcmp.eq.f32.partialorder %v148_v51, 8.507059e+37 }
  0xbe   :  { %v265_v45 = vpop.eup %264 }
  0xbf   :  { %v138_v46 = vadd.f32 1.0, %v265_v45 }
  0xc1   :  { %v267_v47 = vpop.eup %266  ;;  %268 = vrcp.f32 %v138_v46  ;;  %v165_v60 = vand.u32 2147483648, %v138_v46  ;;  %v163_v63 = vand.u32 2147483647, %v138_v46  ;;  %vm159_vm5 = vweird.f32 %v138_v46 }
  0xc2   :  { %v140_v48 = vmul.f32 %v267_v47, %v137_v44  ;;  %vm145_vm1 = vweird.f32 %v267_v47 }
  0xc3   :  { %vm146_vm2 = vmor %vm144_vm0, %vm145_vm1  ;;  %v166_v1 = vor.u32 1.1754944e-38, %v165_v60  ;;  %vm164_vm7 = vcmp.eq.f32.partialorder %v163_v63, 8.507059e+37 }
  0xc4   :  { %v141_v50 = vsub.f32 1.0, %v140_v48 }
  0xc6   :  { %v142_v52 = vmul.f32 %v267_v47, %v141_v50 }
  0xc7   :  { %v269_v53 = vpop.eup %268 }
  0xc8   :  { %v143_v55 = vadd.f32 %v267_v47, %v142_v52  ;;  %v155_v56 = vmul.f32 %v269_v53, %v138_v46  ;;  %vm160_vm4 = vweird.f32 %v269_v53 }
  0xc9   :  { %vm161_vm6 = vmor %vm159_vm5, %vm160_vm4 }
  0xca   :  { %v147_v57 = vsel %vm146_vm2, %v267_v47, %v143_v55  ;;  %v156_v58 = vsub.f32 1.0, %v155_v56 }
  0xcb   :  { %v152_v59 = vsel %vm149_vm3, %v151_v54, %v147_v57 }
  0xcc   :  { %v169_v61 = vmul.f32 %v152_v59, %v124_v36  ;;  %v157_v62 = vmul.f32 %v269_v53, %v156_v58 }
  0xce   :  { %191 = vmatmul.f32.vlgmr.msra.gmra.mxu1 %v169_v61  ;;  %v158_v0 = vadd.f32 %v269_v53, %v157_v62 }
  0xd0   :  { %v162_v2 = vsel %vm161_vm6, %v269_v53, %v158_v0 }
  0xd1   :  { %v167_v3 = vsel %vm164_vm7, %v166_v1, %v162_v2 }
  0xd2   :  { %v170_v4 = vmul.f32 %v167_v3, %v127_v40 }
  0xd4   :  { %194 = vmatmul.f32.vlgmr.msra.gmra.mxu3 %v170_v4 }
 0x14b   :  { %v192_v6 = vpop.f32.mrf.mxu1 }
 0x14c   :  { %v193_v7 = vadd.f32 %v261_v5, %v192_v6 }
 0x14e   :  { %198 = vst [vmem:[#allocation8] sm:$0xff] %v193_v7 }
 0x157   :  { %v195_v8 = vpop.f32.mrf.mxu3 }
 0x158   :  { %v196_v9 = vadd.f32 %v261_v5, %v195_v8 }
 0x15a   :  { %199 = vst [vmem:[#allocation8 + $0x8] sm:$0xff] %v196_v9 }
 0x15b   :  { %212 = dma.vmem_to_hbm [thread:$0]  %s205_s11, 256, %s207_s14, [#allocation4], %s373_s26, %s373_s26, %s374_s27  }
 0x15c   :  { %370 = dma.done.wait [#allocation4], 256  }
 0x15d   :  { %371 = vsyncadd [#allocation4], 4294967040 }
 0x15e   :  { %217 = vsyncpa [#allocation3], 1 }
 0x15f   :  { %218 = vsyncpa [#allocation6], 1 }
 0x160   :  { %219 = vsyncpa [#allocation4], 1 }

</bundles_post_ra>
